<compile_context>
chip_gen: v6e
topology: v6e:2x2x1
jax: 0.10.0
libtpu: 0.0.40
codegen_flags: <defaults>
</compile_context>

<pallas_src>
import jax
import jax.numpy as jnp
from jax.experimental import pallas as pl
from jax.experimental.pallas import tpu as pltpu


def _residual_linear_kernel(xk_ref, xr_ref, w_ref, b_ref, o_ref):
    """Computes one (tm, tn) output tile.

    xk_ref: (tm, H)  compute-dtype x rows (full K for the matmul)
    xr_ref: (tm, tn) compute-dtype x columns matching this output tile (residual)
    w_ref : (H, tn)  compute-dtype weight column strip
    b_ref : (1, tn)  f32 bias strip
    o_ref : (tm, tn) output tile
    """
    # fct(x) = x @ W + b  on the MXU with f32 accumulation.
    y = jnp.dot(xk_ref[...], w_ref[...], preferred_element_type=jnp.float32)
    y = y + b_ref[...]
    # Residual: fct(x) + x, fused on the same VMEM tile (f32 VPU add).
    o_ref[...] = (y + xr_ref[...].astype(jnp.float32)).astype(o_ref.dtype)


def residual_linear(x, w, b, *, tile_m=None, tile_n=None,
                    compute_dtype=jnp.bfloat16, out_dtype=None,
                    vmem_limit_bytes=48 * 1024 * 1024):
    """out = (x @ w + b) + x  with x: (M, H), w: (H, H), b: (1, H)."""
    M, H = x.shape
    assert w.shape == (H, H), f"w must be (H, H), got {w.shape}"
    assert b.shape == (1, H), f"b must be (1, H), got {b.shape}"
    out_dtype = x.dtype if out_dtype is None else out_dtype

    # ---- tile selection ---------------------------------------------------
    # Row tile: 256 is the measured HBM-roofline sweet spot on v6e/v7x
    # (pass tile_m=128 on v5e).  pl.cdiv grid + Pallas edge masking handles
    # M values that don't divide evenly (no tile_m=M fallback).
    if tile_m is None:
        tile_m = 256
    tm = min(tile_m, M)
    if tm < M:
        tm = max(8, (tm // 8) * 8)  # sublane-aligned unless full-extent
    # Column tile: keep the output last dim a multiple of 128 (lane-dense
    # stores) and stream W in (H, tn) strips rather than holding (H, H).
    if H % 128 != 0:
        # TODO(synk): pad H to a multiple of 128 for lane-dense stores; fall
        # back to one full-width (masked-store) tile so awkward H still runs.
        tn = H
    elif tile_n is not None and H % tile_n == 0 and tile_n % 128 == 0:
        tn = tile_n
    else:
        tn = 256 if H % 256 == 0 else 128

    grid = (pl.cdiv(M, tm), H // tn)

    # bf16 operands halve HBM traffic for x / W and hit the fast MXU path on
    # all of v5e/v6e/v7x; accumulation, bias and residual add stay f32.
    xc = x.astype(compute_dtype)
    wc = w.astype(compute_dtype)
    bf = b.astype(jnp.float32)

    in_isz = jnp.dtype(compute_dtype).itemsize
    out_isz = jnp.dtype(out_dtype).itemsize
    cost = pl.CostEstimate(
        flops=2 * M * H * H,
        transcendentals=0,
        bytes_accessed=(2 * M * H * in_isz      # x (matmul view + residual view)
                        + H * H * in_isz        # W
                        + H * 4                 # bias
                        + M * H * out_isz))     # out

    # NOTE: no input_output_aliases — with N-tiling, writing an output column
    # tile would clobber x columns still needed by other j-steps of that row.
    return pl.pallas_call(
        _residual_linear_kernel,
        out_shape=jax.ShapeDtypeStruct((M, H), out_dtype),
        grid_spec=pltpu.PrefetchScalarGridSpec(
            num_scalar_prefetch=0,
            grid=grid,
            in_specs=[
                # Full-K x rows for the matmul; block index is constant across
                # j, so the pipeline skips re-fetching it while j sweeps N.
                pl.BlockSpec((tm, H), lambda i, j: (i, 0)),
                # Matching x column tile for the residual add (avoids a dynamic
                # lane-dim slice in-kernel; costs ~one extra pipelined x pass).
                pl.BlockSpec((tm, tn), lambda i, j: (i, j)),
                # Weight column strip streamed through the pipeline — the full
                # (H, H) weight is never resident in VMEM.
                pl.BlockSpec((H, tn), lambda i, j: (0, j)),
                # Bias strip.
                pl.BlockSpec((1, tn), lambda i, j: (0, j)),
            ],
            out_specs=pl.BlockSpec((tm, tn), lambda i, j: (i, j)),
        ),
        compiler_params=pltpu.CompilerParams(
            # Both axes independent -> megacore sharding on v7x's 2 TensorCores.
            dimension_semantics=("parallel", "parallel"),
            # Explicit VMEM budget: safe on v7x (64 MiB physical); raise toward
            # 96 MiB on v5e/v6e (128 MiB) if you want larger resident tiles.
            vmem_limit_bytes=vmem_limit_bytes,
        ),
        cost_estimate=cost,
    )(xc, xc, wc, bf)


if __name__ == "__main__":
    # Small shapes: batch=2, seq=8, hidden=256 -> x flattened to (16, 256).
    # Tiles chosen so the demo exercises a real (2, 2) pipelined grid.
    B, S, H = 2, 8, 256
    key = jax.random.PRNGKey(0)
    kx, kw, kb = jax.random.split(key, 3)

    x = jax.random.normal(kx, (B, S, H), dtype=jnp.float32)
    # Deterministic "Linear(H, H)" parameters (synthetic, not a checkpoint)
    w = jax.random.normal(kw, (H, H), dtype=jnp.float32) * (1.0 / jnp.sqrt(H))
    b = jax.random.normal(kb, (1, H), dtype=jnp.float32) * 0.01

    x2d = x.reshape(B * S, H)
    out2d = residual_linear(x2d, w, b, tile_m=8, tile_n=128)
    out = out2d.reshape(B, S, H)
    jax.block_until_ready(out)

    # Reference uses the same bf16-operand / f32-accumulate math as the kernel.
    xb = x2d.astype(jnp.bfloat16)
    wb = w.astype(jnp.bfloat16)
    ref = (jnp.dot(xb, wb, preferred_element_type=jnp.float32)
           + b + xb.astype(jnp.float32))
    assert out2d.dtype == x2d.dtype
    assert jnp.allclose(out2d, ref, atol=1e-2, rtol=1e-2), "mismatch vs reference"

    print("KERNEL_OK")
</pallas_src>

<mosaic_0001>
module attributes {stable_mosaic.version = 11 : i64} {
  func.func @_residual_linear_kernel(%arg0: i32, %arg1: i32, %arg2: memref<8x256xbf16, #tpu.memory_space<vmem>>, %arg3: memref<8x128xbf16, #tpu.memory_space<vmem>>, %arg4: memref<256x128xbf16, #tpu.memory_space<vmem>>, %arg5: memref<1x128xf32, #tpu.memory_space<vmem>>, %arg6: memref<8x128xf32, #tpu.memory_space<vmem>>) attributes {dimension_semantics = [#tpu.dimension_semantics<parallel>, #tpu.dimension_semantics<parallel>], iteration_bounds = array<i64: 2, 2>, scalar_prefetch = 0 : i64, scratch_operands = 0 : i64, tpu.core_type = #tpu.core_type<tc>, window_params = [{transform_indices = @transform_0, window_bounds = array<i64: 8, 256>}, {transform_indices = @transform_1, window_bounds = array<i64: 8, 128>}, {transform_indices = @transform_2, window_bounds = array<i64: 256, 128>}, {transform_indices = @transform_3, window_bounds = array<i64: 1, 128>}, {transform_indices = @transform_4, window_bounds = array<i64: 8, 128>}]} {
    %c0 = arith.constant 0 : index
    %c0_0 = arith.constant 0 : index
    %0 = vector.load %arg2[%c0, %c0_0] : memref<8x256xbf16, #tpu.memory_space<vmem>>, vector<8x256xbf16>
    %c0_1 = arith.constant 0 : index
    %c0_2 = arith.constant 0 : index
    %1 = vector.load %arg4[%c0_1, %c0_2] : memref<256x128xbf16, #tpu.memory_space<vmem>>, vector<256x128xbf16>
    %cst = arith.constant dense<0.000000e+00> : vector<8x128xf32>
    %2 = tpu.matmul %0, %1, %cst {dimension_numbers = #tpu.dot_dimension_numbers<[1], [0], [0], [1], [0, 0, 1, 1], [], []>} : vector<8x256xbf16>, vector<256x128xbf16>, vector<8x128xf32> -> vector<8x128xf32>
    %c0_3 = arith.constant 0 : index
    %c0_4 = arith.constant 0 : index
    %3 = vector.load %arg5[%c0_3, %c0_4] : memref<1x128xf32, #tpu.memory_space<vmem>>, vector<1x128xf32>
    %4 = vector.broadcast %3 : vector<1x128xf32> to vector<8x128xf32>
    %5 = arith.addf %2, %4 : vector<8x128xf32>
    %c0_5 = arith.constant 0 : index
    %c0_6 = arith.constant 0 : index
    %6 = vector.load %arg3[%c0_5, %c0_6] : memref<8x128xbf16, #tpu.memory_space<vmem>>, vector<8x128xbf16>
    %7 = arith.extf %6 : vector<8x128xbf16> to vector<8x128xf32>
    %8 = arith.addf %5, %7 : vector<8x128xf32>
    %c0_7 = arith.constant 0 : index
    %c0_8 = arith.constant 0 : index
    %9 = vector.load %arg6[%c0_7, %c0_8] : memref<8x128xf32, #tpu.memory_space<vmem>>, vector<8x128xf32>
    tpu.vector_store %arg6[%c0_7, %c0_8], %8 {strides = array<i32>} : memref<8x128xf32, #tpu.memory_space<vmem>>, vector<8x128xf32>,
    return
  }
  func.func @transform_0(%arg0: i32, %arg1: i32) -> (i32, i32) {
    %c0_i32 = arith.constant 0 : i32
    %c0_i32_0 = arith.constant 0 : i32
    return %arg0, %c0_i32 : i32, i32
  }
  func.func @transform_1(%arg0: i32, %arg1: i32) -> (i32, i32) {
    %c0_i32 = arith.constant 0 : i32
    return %arg0, %arg1 : i32, i32
  }
  func.func @transform_2(%arg0: i32, %arg1: i32) -> (i32, i32) {
    %c0_i32 = arith.constant 0 : i32
    %c0_i32_0 = arith.constant 0 : i32
    return %c0_i32, %arg1 : i32, i32
  }
  func.func @transform_3(%arg0: i32, %arg1: i32) -> (i32, i32) {
    %c0_i32 = arith.constant 0 : i32
    %c0_i32_0 = arith.constant 0 : i32
    return %c0_i32, %arg1 : i32, i32
  }
  func.func @transform_4(%arg0: i32, %arg1: i32) -> (i32, i32) {
    %c0_i32 = arith.constant 0 : i32
    return %arg0, %arg1 : i32, i32
  }
}

</mosaic_0001>

<bundles_post_ra>
// kernel: tpu_custom_call.1
= control target key start
LH: loop header
LB: loop body
LE: loop exit
PB: predicated region body
PF: predicated region fallthrough
CT: control target
= control target key end

     0   :  { %s1509_s0 = inlined_call_operand.hbm [shape: bf16[16,256], index: 0, kind: input, shape index: {}]   ;;  %s1510_s1 = inlined_call_operand.hbm [shape: bf16[16,256], index: 1, kind: input, shape index: {}]   ;;  %s1511_s2 = inlined_call_operand.hbm [shape: bf16[256,256], index: 2, kind: input, shape index: {}]   ;;  %s1512_s3 = inlined_call_operand.vmem [shape: f32[1,256], index: 3, kind: input, shape index: {}]   ;;  %s1513_s4 = inlined_call_operand.hbm [shape: f32[16,256], index: 4, kind: output, shape index: {}]  }
   0x1   :  { %1528 = sst [smem:[#allocation23_spill]] %s1510_s1 }
   0x2   :  { %1529 = sst [smem:[#allocation24_spill]] %s1511_s2 }
   0x3   :  { %1530 = sst [smem:[#allocation25_spill]] %s1512_s3 }
   0x4   :  { %1531 = sst [smem:[#allocation26_spill]] %s1513_s4 }
   0x5   :  { %9 = vsyncpa [#allocation3], 0 }
   0x6   :  { %11 = vsyncpa [#allocation3 + $0x1], 0 }
   0x7   :  { %12 = vsyncpa [#allocation6], 0 }
   0x8   :  { %14 = vsyncpa [#allocation6 + $0x1], 0 }
   0x9   :  { %15 = vsyncpa [#allocation4], 0 }
   0xa   :  { %17 = vsyncpa [#allocation4 + $0x1], 0  ;;  %s1151_s15 = smov 0   ;;  %s1153_s16 = smov 0  }
   0xb   :  { %s1155_s17 = smov 0   ;;  %s1157_s18 = smov 0  }
   0xc   :  { %s1159_s19 = smov 0   ;;  %s1161_s20 = smov 0  }
   0xd   :  { %s1163_s21 = smov 0   ;;  %s1165_s22 = smov 0  }
   0xe   :  { %s1167_s23 = smov 0   ;;  %s1169_s24 = smov 0  }
   0xf   :  { %s1171_s25 = smov 0   ;;  %s1173_s26 = smov 0  }
  0x10   :  { %s1175_s27 = smov 0   ;;  %s1177_s28 = smov 0  }
  0x11 LB: > { %1532 = sst [smem:[#allocation13_spill]] %s1069_s16  ;;  %s1222_s29 = sadd.s32 4294967295, %s1117_s28   ;;  %s1117_s28 = sphi %s1177_s28, %s23_s28   ;;  %s1113_s27 = sphi %s1175_s27, %s1588_s27   ;;  %s1109_s26 = sphi %s1173_s26, %s1587_s26   ;;  %s1105_s25 = sphi %s1171_s25, %s1586_s25   ;;  %s1101_s24 = sphi %s1169_s24, %s1585_s24   ;;  %s1097_s23 = sphi %s1167_s23, %s1584_s23   ;;  %s1093_s22 = sphi %s1165_s22, %s1583_s22   ;;  %s1089_s21 = sphi %s1163_s21, %s1582_s21   ;;  %s1085_s20 = sphi %s1161_s20, %s1581_s20   ;;  %s1081_s19 = sphi %s1159_s19, %s1580_s19   ;;  %s1077_s18 = sphi %s1157_s18, %s1579_s18   ;;  %s1073_s17 = sphi %s1155_s17, %s1578_s17   ;;  %s1069_s16 = sphi %s1153_s16, %s1577_s16   ;;  %s1065_s15 = sphi %s1151_s15, %s1571_s15  }
  0x12   : > { %1533 = sst [smem:[#allocation14_spill]] %s1077_s18  ;;  %s661_s30 = sadd.s32 4294967294, %s1117_s28  }
  0x13   : > { %1534 = sst [smem:[#allocation15_spill]] %s1101_s24  ;;  %s32_s5 = sadd.s32 1, %s1109_s26 }
  0x14   : > { %1535 = sst [smem:[#allocation16_spill]] %s1105_s25  ;;  %s35_s6 = sadd.s32 1, %s1113_s27 }
  0x15   : > { %p33_p0 = scmp.ge.s32.totalorder %s32_s5, 2  ;;  %p1525_p1 = scmp.eq.s32.totalorder %s1117_s28, 0 }
  0x16   : > { %p1524_p2 = scmp.eq.s32.totalorder %s1222_s29, 0  ;;  %s70_s7 = sadd.s32 1, %s1085_s20 }
  0x17   : > { %s1590_s5 = smov (%p33_p0, %s32_s5), 0  ;;  %s1592_s6 = smov (!%p33_p0, %s35_s6), %s1113_s27 }
  0x18   : > { %1536 = sst [smem:[#allocation17_spill]] %s1590_s5  ;;  %s66_s8 = ssub.s32 %s1109_s26, %s1590_s5 }
  0x19   : > { %p77_p3 = scmp.ne.s32.totalorder %s1085_s20, %s1081_s19  ;;  %p37_p4 = scmp.ge.s32.totalorder %s1592_s6, 2 }
  0x1a   : > { %p83_p5 = scmp.ne.s32.totalorder %s1081_s19, %s1077_s18  ;;  %p94_p7 = scmp.eq.s32.totalorder %s66_s8, 0 }
  0x1b   : > { %p1244_p6 = por %p77_p3, %p1525_p1  ;;  %s1594_s6 = smov (%p37_p4, %s1592_s6), 0 }
  0x1c   : > { %1538 = sst [smem:[#allocation18_spill]] %s1594_s6  ;;  %p1255_p8 = por %p83_p5, %p1524_p2 }
  0x1d   : > { %s96_s11 = sadd.s32 1, %s1073_s17  ;;  %s1262_s12 = ssub.s32 %s1113_s27, %s1594_s6 }
  0x1e   : > { %p103_p9 = scmp.ne.s32.totalorder %s1073_s17, %s1069_s16  ;;  %s67_s13 = sor.u32 %s66_s8, %s1262_s12 }
  0x1f   : > { %p68_p11 = scmp.eq.s32.totalorder %s67_s13, 0  ;;  %p109_p13 = scmp.ne.s32.totalorder %s1069_s16, %s1065_s15 }
  0x20   : > { %p1270_p12 = por %p103_p9, %p1525_p1  ;;  %p161_p0 = scmp.eq.s32.totalorder %s1222_s29, 3 }
  0x21   : > { %s1275_s5 = scalar_select %p94_p7, %s1073_s17, %s96_s11  }
  0x22   : > { %s1278_s4 = scalar_select %p68_p11, %s1085_s20, %s70_s7  }
  0x23   : > { %1541 = sst [smem:[#allocation19_spill]] %s1275_s5  ;;  %p167_p4 = scmp.eq.s32.totalorder %s661_s30, 3 }
  0x24   : > { %1542 = sst [smem:[#allocation20_spill]] %s1278_s4  ;;  %p1285_p10 = por %p109_p13, %p1524_p2 }
  0x25   : > { %p1292_p9 = por %p161_p0, %p77_p3  ;;  %p1299_p7 = por %p167_p4, %p83_p5 }
  0x26   : > { %s1543_s8 = scalar_select %p1285_p10, 1, 0 }
  0x27   : > { %s1545_s13 = scalar_select %p1292_p9, 1, 0 }
  0x28   : > { %1544 = sst [smem:[#allocation21_spill]] %s1543_s8  ;;  %p1523_p11 = scmp.lt.s32.totalorder %s1117_s28, 4 }
  0x29   : > { %s1546_s15 = scalar_select %p1299_p7, 1, 0 }
  0x2a   : > { %s206_s30 = sand.u32 1, %s1117_s28   ;;  %s208_s7 = sand.u32 1, %s1085_s20  }
  0x2b   : > { %1547 = sst [smem:[#allocation22_spill]] %s1546_s15  ;;  %s667_s11 = sshll.u32 %s208_s7, 2 }
  0x2c   : > { %s668_s6 = sshll.u32 %s1113_s27, 1  ;;  %s210_s5 = scalar_lea.vmem [#allocation5], %s667_s11 }
  0x2d   : > { %s215_s4 = sadd.s32 %s1109_s26, %s668_s6  ;;  %s219_s3 = sshll.u32 %s210_s5, 4  ;;  %s220_s3 = int_to_ptr.vmem [resolvable:$true] %s219_s3 }
  0x2e   : > { %s669_s25 = sshll.u32 %s215_s4, 6  ;;  %s1548_s1 = sld [smem:[#allocation23_spill]] }
  0x2f   : > { %p1315_p3 = pnand %p1523_p11, %p1244_p6  ;;  %s671_s15 = sshll.u32 %s1109_s26, 6 }
  0x30   : > { %p1324_p5 = pnand %p1523_p11, %p1270_p12  ;;  %s1551_s2 = sld [smem:[#allocation24_spill]] }
  0x31   : > { %s1333_s24 = scalar_lea.sflag [#allocation6], %s206_s30  ;;  %p883_p6 = pneg %p1315_p3 }
  0x32   : > { %s1119_s9 = smov [#allocation5]  }
  0x33   : > { %s899_s14 = sshll.u32 %s1119_s9, 4  ;;  %s900_s14 = int_to_ptr.vmem [resolvable:$false] %s899_s14 }
  0x34   : > { %s217_s16 = scalar_lea.hbm %s1548_s1, %s669_s25  ;;  %s894_s25 = scalar_lea.vmem %s220_s3, 64 }
  0x35   : > { %p895_p13 = scmp.ne.s32.totalorder %s220_s3, %s894_s25  ;;  %s901_s8 = scalar_lea.vmem %s900_s14, 128 }
  0x36   : > { %s1331_s7 = scalar_lea.hbm %s1551_s2, %s671_s15  ;;  %p902_p12 = scmp.lt.s32.totalorder %s220_s3, %s900_s14 }
  0x37   : > { %p897_p0 = pnand %p895_p13, %p883_p6  ;;  %p903_p11 = scmp.lt.s32.totalorder %s901_s8, %s894_s25 }
  0x39   : > { %p898_p4 = pneg %p897_p0  ;;  %p904_p2 = por %p903_p11, %p902_p12 }
  0x3b   : > { %p905_p1 = pnand %p904_p2, %p898_p4 }
  0x3d   : > { %908 = shalt.err (!%p905_p1)
}
  0x3e   : > { %738 = dma.hbm_to_vmem [thread:$0]  (!%p1315_p3), %s217_s16, 64, %s220_s3, %s1333_s24  }
  0x3f   : > { %p672_p2 = scmp.ge.s32.totalorder %s1117_s28, 1  ;;  %p250_p1 = scmp.lt.s32.totalorder %s1117_s28, 5 }
  0x40   : > { %s42_s15 = sadd.s32 1, %s1097_s23  ;;  %p49_p6 = scmp.ne.s32.totalorder %s1097_s23, %s1093_s22 }
  0x41   : > { %p1342_p11 = pnand %p672_p2, %p250_p1  ;;  %p1553_p13 = scmp.eq.s32.totalorder %s1262_s12, 0 }
  0x42   : > { %p1554_p0 = scmp.eq.s32.totalorder %s1117_s28, 0  ;;  %p55_p12 = scmp.ne.s32.totalorder %s1093_s22, %s1089_s21 }
  0x43   : > { %s1352_s30 = scalar_select %p1553_p13, %s1097_s23, %s42_s15  }
  0x44   : > { %p51_p4 = por %p1554_p0, %p49_p6  ;;  %s187_s11 = sand.u32 1, %s1097_s23  }
  0x45   : > { %s701_s4 = sshll.u32 %s1113_s27, 7  ;;  %p1555_p7 = scmp.eq.s32.totalorder %s1222_s29, 0 }
  0x46   : > { %s664_s16 = sshll.u32 %s187_s11, 3  ;;  %s197_s9 = scalar_lea.hbm %s1509_s0, %s701_s4 }
  0x47   : > { %p1362_p9 = por %p1555_p7, %p55_p12  ;;  %p1557_p3 = scmp.lt.s32.totalorder %s1117_s28, 4 }
  0x48   : > { %s191_s14 = scalar_lea.vmem [#allocation2], %s664_s16  ;;  %s228_s8 = sand.u32 1, %s1073_s17  }
  0x49   : > { %p1371_p2 = pnand %p1557_p3, %p51_p4  ;;  %s199_s21 = sshll.u32 %s191_s14, 4  ;;  %s200_s21 = int_to_ptr.vmem [resolvable:$true] %s199_s21 }
  0x4a   : > { %s188_s15 = scalar_lea.sflag [#allocation3], %s187_s11  ;;  %s922_s1 = scalar_lea.vmem %s200_s21, 128 }
  0x4b   : > { %p911_p7 = pneg %p1371_p2  ;;  %p923_p1 = scmp.ne.s32.totalorder %s200_s21, %s922_s1 }
  0x4c   : > { %s1120_s2 = smov [#allocation2]  }
  0x4d   : > { %p925_p6 = pnand %p923_p1, %p911_p7  ;;  %s927_s5 = sshll.u32 %s1120_s2, 4  ;;  %s928_s5 = int_to_ptr.vmem [resolvable:$false] %s927_s5 }
  0x4e   : > { %s929_s4 = scalar_lea.vmem %s928_s5, 256  ;;  %p930_p0 = scmp.lt.s32.totalorder %s200_s21, %s928_s5 }
  0x4f   : > { %p926_p13 = pneg %p925_p6  ;;  %p931_p4 = scmp.lt.s32.totalorder %s929_s4, %s922_s1 }
  0x51   : > { %p932_p12 = por %p931_p4, %p930_p0 }
  0x53   : > { %p933_p3 = pnand %p932_p12, %p926_p13 }
  0x55   : > { %936 = shalt.err (!%p933_p3)
}
  0x56   : > { %735 = dma.hbm_to_vmem [thread:$0]  (!%p1371_p2), %s197_s9, 128, %s200_s21, %s188_s15  }
  0x57   : > { %s670_s11 = sshll.u32 %s228_s8, 7  ;;  %p939_p7 = pneg %p1324_p5 }
  0x58   : > { %s230_s16 = scalar_lea.vmem [#allocation7], %s670_s11  ;;  %s1121_s2 = smov [#allocation7]  }
  0x59   : > { %s236_s25 = sshll.u32 %s230_s16, 4  ;;  %s955_s5 = sshll.u32 %s1121_s2, 4  ;;  %s237_s25 = int_to_ptr.vmem [resolvable:$true] %s236_s25  ;;  %s956_s5 = int_to_ptr.vmem [resolvable:$false] %s955_s5 }
  0x5a   : > { %s950_s14 = scalar_lea.vmem %s237_s25, 2048  ;;  %s957_s1 = scalar_lea.vmem %s956_s5, 4096 }
  0x5b   : > { %p951_p1 = scmp.ne.s32.totalorder %s237_s25, %s950_s14  ;;  %p958_p13 = scmp.lt.s32.totalorder %s237_s25, %s956_s5 }
  0x5c   : > { %p959_p0 = scmp.lt.s32.totalorder %s957_s1, %s950_s14 }
  0x5d   : > { %p953_p6 = pnand %p951_p1, %p939_p7 }
  0x5e   : > { %p960_p4 = por %p959_p0, %p958_p13 }
  0x5f   : > { %p954_p10 = pneg %p953_p6 }
  0x61   : > { %p961_p12 = pnand %p960_p4, %p954_p10 }
  0x63   : > { %964 = shalt.err (!%p961_p12)
}
  0x64   : > { %s1122_s9 = smov 128   ;;  %s1123_s12 = smov 64  }
  0x65   : > { %s1124_s21 = smov 4   ;;  %254 = sbr.rel (%p1342_p11) target bundleno = 368 (0x170), region = 36 }
  0x66   : > { %741 = dma.hbm_to_vmem [thread:$0]  (!%p1324_p5), %s1331_s7, 2048, %s237_s25, %s1333_s24, %s1122_s9, %s1123_s12, %s1124_s21  }
  0x67   : > { %s256_s8 = sand.u32 (!%p1342_p11), 1, %s1093_s22  }
  0x68   : > { %s1389_s15 = sshll.u32 (!%p1342_p11), %s256_s8, 3  ;;  %s257_s4 = scalar_lea.sflag (!%p1342_p11), [#allocation3], %s256_s8 }
  0x69   : > { %s260_s11 = scalar_lea.vmem (!%p1342_p11), [#allocation2], %s1389_s15 }
  0x6a   : > { %1048 = dma.done.wait (%p1362_p9), %s257_s4, 128  }
  0x6b   : > { %1050 = vsyncadd (%p1362_p9), %s257_s4, 4294967168  ;;  %s265_s6 = sand.u32 1, %s1222_s29   ;;  %s1398_s7 = sand.u32 1, %s1081_s19  }
  0x6c   : > { %s674_s24 = sshll.u32 %s1398_s7, 2  ;;  %s266_s18 = scalar_lea.sflag [#allocation6], %s265_s6 }
  0x6d   : > { %s1401_s16 = scalar_lea.vmem [#allocation5], %s674_s24 }
  0x6e   : > { %1052 = dma.done.wait (%p1255_p8), %s266_s18, 64  }
  0x6f   : > { %1054 = vsyncadd (%p1255_p8), %s266_s18, 4294967232  ;;  %s1559_s25 = sld [smem:[#allocation13_spill]] }
  0x70   : > { %s1560_s14 = sld [smem:[#allocation21_spill]] }
  0x75   : > { %s276_s3 = sand.u32 1, %s1559_s25  }
  0x76   : > { %s675_s2 = sshll.u32 %s276_s3, 7  ;;  %p1561_p10 = scmp.ne.s32.totalorder %s1560_s14, 0 }
  0x77   : > { %s1408_s5 = scalar_lea.vmem [#allocation7], %s675_s2 }
  0x78   : > { %1056 = dma.done.wait (%p1561_p10), %s266_s18, 2048  }
  0x79   : > { %1058 = vsyncadd (%p1561_p10), %s266_s18, 4294965248  ;;  %v863_v0 = vld [vmem:[%s1408_s5 + $0x78] sm:$0xff]   ;;  %v865_v2 = vld [vmem:[%s1408_s5 + $0x70] sm:$0xff]   ;;  %s1562_s29 = sld [smem:[#allocation15_spill]]  ;;  %s676_s9 = sshll.u32 %s1398_s7, 3 }
  0x7a   : > { %v864_v1 = vld [vmem:[%s1408_s5 + $0x38] sm:$0xff]   ;;  %702 = vmatprep.subr.bf16.mxu0 %v863_v0  ;;  %v866_v3 = vld [vmem:[%s1408_s5 + $0x30] sm:$0xff]   ;;  %v867_v4 = vld [vmem:[%s1408_s5 + $0x68] sm:$0xff]   ;;  %s1563_s10 = sld [smem:[#allocation16_spill]]  ;;  %s315_s24 = scalar_lea.vmem [#allocation8], %s676_s9 }
  0x7b   : > { %703 = vmatpush3.bf16.msra.mxu0 %v864_v1  ;;  %v868_v5 = vld [vmem:[%s1408_s5 + $0x28] sm:$0xff]   ;;  %v869_v6 = vld [vmem:[%s1408_s5 + $0x60] sm:$0xff]   ;;  %v871_v8 = vld [vmem:[%s1408_s5 + $0x58] sm:$0xff]   ;;  %s1564_s15 = sld [smem:[#allocation25_spill]]  ;;  %s523_s18 = sshll.u32 %s315_s24, 4  ;;  %s524_s18 = int_to_ptr.vmem [resolvable:$true] %s523_s18 }
  0x7c   : > { %704 = vmatprep.subr.bf16.mxu0 %v865_v2  ;;  %v870_v7 = vld [vmem:[%s1408_s5 + $0x20] sm:$0xff]   ;;  %v872_v9 = vld [vmem:[%s1408_s5 + $0x18] sm:$0xff]   ;;  %v873_v10 = vld [vmem:[%s1408_s5 + $0x50] sm:$0xff]   ;;  %s1565_s3 = sld [smem:[#allocation26_spill]]  ;;  %p1566_p5 = scmp.ne.s32.totalorder %s1545_s13, 0 }
  0x7d   : > { %v320_v11 = vld [vmem:[%s260_s11] sm:$0xff]  ;;  %v877_v16 = vld [vmem:[%s1408_s5 + $0x40] sm:$0xff]   ;;  %v503_v20 = vld [vmem:[%s1401_s16] sm:$0xf]  ;;  %s508_s16 = scalar_lea.sflag [#allocation4], %s1398_s7 }
  0x7e   : > { %v679_v12 = vcombine.high %v320_v11, %v320_v11  ;;  %v874_v13 = vld [vmem:[%s1408_s5 + $0x10] sm:$0xff]   ;;  %v875_v14 = vld [vmem:[%s1408_s5 + $0x48] sm:$0xff]   ;;  %v878_v17 = vld [vmem:[%s1408_s5] sm:$0xff]   ;;  %v678_v18 = vcombine.low %v320_v11, %v320_v11  ;;  %v504_v24 = vunpack.c.l.bf16 %v503_v20 }
  0x7f   : > { %705 = vmatpush3.bf16.msra.mxu0 %v866_v3  ;;  %v876_v15 = vld [vmem:[%s1408_s5 + $0x8] sm:$0xff]   ;;  %p316_p8 = scmp.lt.s32.totalorder %s1562_s29, 1  ;;  %s965_s5 = scalar_lea.vmem %s524_s18, 128 }
  0x80   : > { %706 = vmatprep.subr.bf16.mxu0 %v867_v4  ;;  %495 = vmatprep.mubr.bf16.mxu0 %v679_v12  ;;  %s697_s12 = sshll.u32 %s1563_s10, 1  ;;  %p966_p9 = scmp.ne.s32.totalorder %s524_s18, %s965_s5 }
  0x81   : > { %s317_s1 = scalar_select %p316_p8, %s1562_s29, 1 }
  0x82   : > { %s519_s11 = sadd.s32 %s1562_s29, %s697_s12  ;;  %p967_p11 = pnand %p966_p9, %p1566_p5 }
  0x83   : > { %707 = vmatpush3.bf16.msra.mxu0 %v868_v5  ;;  %s318_s4 = scalar_lea.vmem %s1564_s15, %s317_s1  ;;  %s698_s6 = sshll.u32 %s519_s11, 7 }
  0x84   : > { %708 = vmatprep.subr.bf16.mxu0 %v869_v6  ;;  %v677_v21 = vld [vmem:[%s318_s4] ss:$0 sm:$0xff]  ;;  %s521_s2 = scalar_lea.hbm %s1565_s3, %s698_s6  ;;  %p968_p2 = pneg %p967_p11 }
  0x85   : > { %s1125_s29 = smov [#allocation8]  }
  0x86   : > { %s969_s10 = sshll.u32 %s1125_s29, 4  ;;  %s970_s10 = int_to_ptr.vmem [resolvable:$false] %s969_s10 }
  0x87   : > { %709 = vmatpush3.bf16.msra.mxu0 %v870_v7  ;;  %s971_s1 = scalar_lea.vmem %s970_s10, 256  ;;  %p972_p3 = scmp.lt.s32.totalorder %s524_s18, %s970_s10 }
  0x88   : > { %710 = vmatprep.subr.bf16.mxu0 %v871_v8  ;;  %p973_p7 = scmp.lt.s32.totalorder %s971_s1, %s965_s5 }
  0x8a   : > { %p974_p1 = por %p973_p7, %p972_p3 }
  0x8b   : > { %711 = vmatpush3.bf16.msra.mxu0 %v872_v9 }
  0x8c   : > { %712 = vmatprep.subr.bf16.mxu0 %v873_v10  ;;  %p975_p6 = pnand %p974_p1, %p968_p2 }
  0x8f   : > { %713 = vmatpush3.bf16.msra.mxu0 %v874_v13 }
  0x90   : > { %714 = vmatprep.subr.bf16.mxu0 %v875_v14 }
  0x93   : > { %715 = vmatpush3.bf16.msra.mxu0 %v876_v15 }
  0x94   : > { %716 = vmatprep.subr.bf16.mxu0 %v877_v16 }
  0x97   : > { %717 = vmatpush3.bf16.msra.mxu0 %v878_v17 }
  0x9a   : > { %496 = vmatmul.mubr.bf16.vlgmr.msra.gmra.mxu0 %v678_v18 }
 0x15a   : > { %v718_v19 = vpop.f32.mrf.mxu0 }
 0x15c   : > { %v719_v22 = vpop.f32.mrf.mxu0 }
 0x15d   : > { %v720_v23 = vadd.f32 %v719_v22, %v718_v19 }
 0x15e   : > { %v721_v25 = vpop.f32.mrf.mxu0 }
 0x15f   : > { %v498_v26 = vadd.f32 %v720_v23, %v677_v21 }
 0x160   : > { %v722_v27 = vpop.f32.mrf.mxu0 }
 0x161   : > { %v505_v28 = vadd.f32 %v504_v24, %v498_v26 }
 0x163   : > { %506 = vst [vmem:[%s315_s24] sm:$0xff] %v505_v28 }
 0x164   : > { %978 = shalt.err (!%p975_p6)
}
 0x165   : > { %s979_s9 = scalar_lea.hbm %s521_s2, 128  ;;  %s983_s21 = scalar_lea.hbm %s1565_s3, 512 }
 0x166   : > { %p980_p13 = scmp.ne.s32.totalorder %s521_s2, %s979_s9  ;;  %p984_p12 = scmp.lt.s32.totalorder %s521_s2, %s1565_s3 }
 0x167   : > { %p985_p10 = scmp.lt.s32.totalorder %s983_s21, %s979_s9 }
 0x168   : > { %p981_p0 = pnand %p980_p13, %p1566_p5 }
 0x169   : > { %p986_p8 = por %p985_p10, %p984_p12 }
 0x16a   : > { %p982_p4 = pneg %p981_p0 }
 0x16c   : > { %p987_p9 = pnand %p986_p8, %p982_p4 }
 0x16e   : > { %990 = shalt.err (!%p987_p9)
}
 0x16f   : > { %730 = dma.vmem_to_hbm [thread:$0]  (%p1566_p5), %s524_s18, 128, %s521_s2, %s508_s16  }
 0x170 PF: > { %s1567_s4 = sld [smem:[#allocation14_spill]]  ;;  %p747_p11 = scmp.ge.s32.totalorder %s1117_s28, 2 }
 0x171   : > { %s1568_s11 = sld [smem:[#allocation22_spill]] }
 0x176   : > { %s535_s6 = sand.u32 1, %s1567_s4  }
 0x177   : > { %p1569_p2 = scmp.ne.s32.totalorder %s1568_s11, 0  ;;  %s536_s24 = scalar_lea.sflag [#allocation4], %s535_s6 }
 0x179   : > { %p743_p3 = pnand %p747_p11, %p1569_p2 }
 0x17b   : > { %p744_p7 = pneg %p743_p3 }
 0x17d   : > { %1060 = dma.done.wait (%p744_p7), %s536_s24, 128  }
 0x17e   : > { %1062 = vsyncadd (%p744_p7), %s536_s24, 4294967168  ;;  %s23_s28 = sadd.s32 1, %s1117_s28   ;;  %s1571_s15 = sld [smem:[#allocation13_spill]] }
 0x17f   : > { %p1462_p1 = scmp.ge.s32.totalorder %s23_s28, 6   ;;  %s1572_s13 = sld [smem:[#allocation19_spill]] }
 0x180   : > { %s1573_s14 = sld [smem:[#allocation20_spill]]  ;;  %s1577_s16 = smov %s1073_s17 }
 0x181   : > { %s1574_s2 = sld [smem:[#allocation17_spill]]  ;;  %s1579_s18 = smov %s1081_s19 }
 0x182   : > { %s1575_s5 = sld [smem:[#allocation18_spill]]  ;;  %s1580_s19 = smov %s1085_s20 }
 0x183   : > { %s1582_s21 = smov %s1093_s22  ;;  %s1583_s22 = smov %s1097_s23 }
 0x184   : > { %s1584_s23 = smov %s1352_s30  ;;  %s1585_s24 = smov %s1109_s26 }
 0x185   : > { %s1578_s17 = smov %s1572_s13  ;;  %s1586_s25 = smov %s1113_s27 }
 0x186   : > { %s1581_s20 = smov %s1573_s14  ;;  %22 = sbr.rel (!%p1462_p1) target bundleno = 17 (0x11), region = 108 }
 0x187   : > { %s1587_s26 = smov %s1574_s2 }
 0x188   : > { %s1588_s27 = smov %s1575_s5 }
 0x18b   :  { %541 = vsyncpa [#allocation3], 1 }
 0x18c   :  { %543 = vsyncpa [#allocation3 + $0x1], 1 }
 0x18d   :  { %544 = vsyncpa [#allocation6], 1 }
 0x18e   :  { %546 = vsyncpa [#allocation6 + $0x1], 1 }
 0x18f   :  { %547 = vsyncpa [#allocation4], 1 }
 0x190   :  { %549 = vsyncpa [#allocation4 + $0x1], 1 }

</bundles_post_ra>
